<compile_context>
chip_gen: v7x
topology: tpu7x:2x2x1
jax: 0.10.0
libtpu: 0.0.40
codegen_flags: <defaults>
</compile_context>

<pallas_src>
import jax
import jax.numpy as jnp
from jax.experimental import pallas as pl
from jax.experimental.pallas import tpu as pltpu


_MiB = 1024 * 1024


def _tpu_memory_policy():
    """Best-effort hardware query -> (num_tensorcores, vmem_limit_bytes, target_block_bytes).

    Falls back to defaults that are safe on every TPU generation if the query
    fails or fields are missing.
    """
    num_tc = 1
    vmem_cap = None
    try:
        info = pltpu.get_tpu_info()
        cap = int(getattr(info, "vmem_capacity_bytes", 0))
        vmem_cap = cap if cap > 0 else None
        for attr in ("num_tensorcores", "tensorcores_per_chip",
                     "num_cores", "cores_per_chip"):
            v = getattr(info, attr, None)
            if v:
                num_tc = int(v)
                break
    except Exception:
        pass

    if vmem_cap is None:
        # Unknown hardware: conservative defaults valid on v5e/v6e/v7x.
        return max(num_tc, 1), 32 * _MiB, 2 * _MiB

    if num_tc == 1 and vmem_cap <= 64 * _MiB:
        num_tc = 2  # v7x heuristic: 64 MiB VMEM per TC, 2 TensorCores per chip.

    # Leave headroom below the physical ceiling; bigger blocks on 128 MiB parts.
    vmem_limit = min(100 * _MiB, (vmem_cap * 3) // 4)
    target_block = 4 * _MiB if vmem_cap >= 100 * _MiB else 2 * _MiB
    return num_tc, vmem_limit, target_block


def _choose_batch_tile(B, C, L, itemsize, num_tc, target_bytes, vmem_limit):
    """Batch-tile size TB so a (TB, C, L) block hits ~target_bytes of *padded* VMEM,
    fits the double-buffered in+out budget, and (on 2-TC parts) leaves >=2 grid steps."""
    # VMEM stores the padded (sublane, lane) layout: C rounds up to the sublane
    # packing (8 for f32, 16 for bf16, 32 for int8/fp8), L rounds up to 128 lanes.
    sub = max(8, 32 // max(1, itemsize))
    c_pad = ((C + sub - 1) // sub) * sub
    l_pad = ((L + 127) // 128) * 128
    per_batch = max(1, c_pad * l_pad * itemsize)

    cap = max(1, target_bytes // per_batch)
    # Double-buffered input + output => ~4x the block resident in VMEM.
    cap = min(cap, max(1, int(vmem_limit * 0.9) // (4 * per_batch)))
    if num_tc >= 2 and B >= 2:
        cap = min(cap, B // 2)  # keep >= 2 grid steps so both TensorCores get work
    return int(max(1, min(cap, B)))


def spectral_spatial_attention_kernel(w_ref, x_ref, o_ref):
    """One (TB, C, L) batch tile per grid step.

    w_ref : SMEM (2, 3) float32 -- Conv1d(2,1,3) weight (out-channel squeezed);
            row 0 (the avg-pool channel) is pre-scaled by 1/C on the host.
    x_ref : VMEM (TB, C, L), native dtype.
    o_ref : VMEM (TB, C, L), native dtype.
    """
    x = x_ref[...]                                              # (TB, C, L)

    # Channel pooling with f32 accumulation only on the reduced rows; the full
    # tile is never upcast (no extra VMEM round trip for bf16 inputs).
    s = jnp.sum(x, axis=1, keepdims=True, dtype=jnp.float32)    # (TB,1,L) == C*mean
    mx = jnp.max(x, axis=1, keepdims=True).astype(jnp.float32)  # (TB,1,L)

    # Conv1d(2 -> 1, kernel=3, padding=1, bias=False), cross-correlation:
    #   conv[l] = w[0,0]*avg[l-1] + w[0,1]*avg[l] + w[0,2]*avg[l+1]
    #           + w[1,0]*mx [l-1] + w[1,1]*mx [l] + w[1,2]*mx [l+1]
    # (1/C already folded into w[0,:]).  Combine avg/max taps before shifting
    # -> only 2 rolls + 2 masked selects.
    t_left = w_ref[0, 0] * s + w_ref[1, 0] * mx     # taps reading column l-1
    t_mid = w_ref[0, 1] * s + w_ref[1, 1] * mx      # taps reading column l
    t_right = w_ref[0, 2] * s + w_ref[1, 2] * mx    # taps reading column l+1

    L = t_mid.shape[-1]
    lane = jax.lax.broadcasted_iota(jnp.int32, t_mid.shape, 2)  # hoisted once

    # pltpu.roll requires non-negative shifts: use +1 and L-1 (== -1 mod L).
    left = pltpu.roll(t_left, shift=1, axis=2)        # left[l]  = t_left[l-1]
    right = pltpu.roll(t_right, shift=L - 1, axis=2)  # right[l] = t_right[l+1]

    zero = jnp.zeros_like(t_mid)
    conv = (t_mid
            + jnp.where(lane >= 1, left, zero)        # zero-pad at l == 0
            + jnp.where(lane < L - 1, right, zero))   # zero-pad at l == L-1

    att = jax.nn.sigmoid(conv).astype(x_ref.dtype)    # (TB, 1, L)
    o_ref[...] = att * x                              # broadcast over channels, native dtype


def spectral_spatial_attention(x, conv_weight):
    """x: (B, C, L); conv_weight: (1, 2, 3) float32 (PyTorch Conv1d layout)."""
    B, C, L = x.shape

    # Fold the 1/C of the mean pooling into the avg-row weights (kernel uses sum).
    w = conv_weight.reshape(2, 3).astype(jnp.float32)
    w = w * jnp.array([[1.0 / C], [1.0]], dtype=jnp.float32)

    itemsize = jnp.dtype(x.dtype).itemsize
    num_tc, vmem_limit, target_bytes = _tpu_memory_policy()
    TB = _choose_batch_tile(B, C, L, itemsize, num_tc, target_bytes, vmem_limit)
    grid = (pl.cdiv(B, TB),)   # ragged last tile OK: batch rows independent,
                               # out-of-range stores are masked.

    cost = pl.CostEstimate(
        flops=int(3 * B * C * L + 14 * B * L),         # pool + conv + att*x
        transcendentals=int(B * L),                    # sigmoid
        bytes_accessed=int(2 * B * C * L * itemsize),  # read x + write out
    )

    return pl.pallas_call(
        spectral_spatial_attention_kernel,
        out_shape=jax.ShapeDtypeStruct((B, C, L), x.dtype),
        grid_spec=pltpu.PrefetchScalarGridSpec(
            num_scalar_prefetch=0,
            grid=grid,
            in_specs=[
                # (2,3) weights stay resident in SMEM; block index never changes
                # so there is no per-step re-fetch.
                pl.BlockSpec(memory_space=pltpu.MemorySpace.SMEM),
                pl.BlockSpec((TB, C, L), lambda b: (b, 0, 0)),       # x batch tile
            ],
            out_specs=pl.BlockSpec((TB, C, L), lambda b: (b, 0, 0)),
        ),
        compiler_params=pltpu.CompilerParams(
            dimension_semantics=("parallel",),
            vmem_limit_bytes=int(vmem_limit),
        ),
        cost_estimate=cost,
    )(w, x)


def _reference(x, conv_weight):
    """Plain-JAX reference of the PyTorch forward (for sanity checking)."""
    avg = jnp.mean(x, axis=1, keepdims=True)                 # (B,1,L)
    mx = jnp.max(x, axis=1, keepdims=True)                   # (B,1,L)
    cat = jnp.concatenate([avg, mx], axis=1)                 # (B,2,L)
    out = jax.lax.conv_general_dilated(
        cat, conv_weight,
        window_strides=(1,), padding=((1, 1),),
        dimension_numbers=("NCH", "OIH", "NCH"),
    )                                                        # (B,1,L)
    att = jax.nn.sigmoid(out)
    return att * x


if __name__ == "__main__":
    key = jax.random.PRNGKey(0)
    kx, kw = jax.random.split(key)

    B, C, L = 2, 4, 128
    x = jax.random.normal(kx, (B, C, L), dtype=jnp.float32)

    # Deterministic Conv1d(2, 1, 3, bias=False) weight, shape (out=1, in=2, k=3).
    fan_in = 2 * 3
    conv_weight = jax.random.normal(kw, (1, 2, 3), dtype=jnp.float32) / jnp.sqrt(fan_in)

    out = spectral_spatial_attention(x, conv_weight)
    out = jax.block_until_ready(out)

    ref = jax.block_until_ready(_reference(x, conv_weight))
    assert out.shape == (B, C, L)
    assert jnp.allclose(out, ref, atol=1e-5, rtol=1e-5), "mismatch vs reference"

    print("KERNEL_OK")
</pallas_src>

<mosaic_0001>
module attributes {stable_mosaic.version = 11 : i64} {
  func.func @spectral_spatial_attention_kernel(%arg0: i32, %arg1: memref<2x3xf32, #tpu.memory_space<smem>>, %arg2: memref<2x4x128xf32, #tpu.memory_space<vmem>>, %arg3: memref<2x4x128xf32, #tpu.memory_space<vmem>>) attributes {dimension_semantics = [#tpu.dimension_semantics<parallel>], iteration_bounds = array<i64: 1>, scalar_prefetch = 0 : i64, scratch_operands = 0 : i64, tpu.core_type = #tpu.core_type<tc>, window_params = [{transform_indices = @transform_0, window_bounds = array<i64: 2, 3>}, {transform_indices = @transform_1, window_bounds = array<i64: 2, 4, 128>}, {transform_indices = @transform_2, window_bounds = array<i64: 2, 4, 128>}]} {
    %c0 = arith.constant 0 : index
    %c0_0 = arith.constant 0 : index
    %c0_1 = arith.constant 0 : index
    %0 = vector.load %arg2[%c0, %c0_0, %c0_1] : memref<2x4x128xf32, #tpu.memory_space<vmem>>, vector<2x4x128xf32>
    %cst = arith.constant dense<0.000000e+00> : vector<2x128xf32>
    %1 = vector.multi_reduction <add>, %0, %cst [1] : vector<2x4x128xf32> to vector<2x128xf32>
    %2 = vector.shape_cast %1 : vector<2x128xf32> to vector<2x1x128xf32>
    %cst_2 = arith.constant dense<0xFF800000> : vector<2x128xf32>
    %3 = vector.multi_reduction <maximumf>, %0, %cst_2 [1] : vector<2x4x128xf32> to vector<2x128xf32>
    %4 = vector.shape_cast %3 : vector<2x128xf32> to vector<2x1x128xf32>
    %c0_3 = arith.constant 0 : index
    %c0_4 = arith.constant 0 : index
    %5 = memref.load %arg1[%c0_3, %c0_4] : memref<2x3xf32, #tpu.memory_space<smem>>
    %6 = vector.broadcast %5 : f32 to vector<2x1x128xf32>
    %7 = arith.mulf %6, %2 : vector<2x1x128xf32>
    %c1 = arith.constant 1 : index
    %c0_5 = arith.constant 0 : index
    %8 = memref.load %arg1[%c1, %c0_5] : memref<2x3xf32, #tpu.memory_space<smem>>
    %9 = vector.broadcast %8 : f32 to vector<2x1x128xf32>
    %10 = arith.mulf %9, %4 : vector<2x1x128xf32>
    %11 = arith.addf %7, %10 : vector<2x1x128xf32>
    %c0_6 = arith.constant 0 : index
    %c1_7 = arith.constant 1 : index
    %12 = memref.load %arg1[%c0_6, %c1_7] : memref<2x3xf32, #tpu.memory_space<smem>>
    %13 = vector.broadcast %12 : f32 to vector<2x1x128xf32>
    %14 = arith.mulf %13, %2 : vector<2x1x128xf32>
    %c1_8 = arith.constant 1 : index
    %c1_9 = arith.constant 1 : index
    %15 = memref.load %arg1[%c1_8, %c1_9] : memref<2x3xf32, #tpu.memory_space<smem>>
    %16 = vector.broadcast %15 : f32 to vector<2x1x128xf32>
    %17 = arith.mulf %16, %4 : vector<2x1x128xf32>
    %18 = arith.addf %14, %17 : vector<2x1x128xf32>
    %c0_10 = arith.constant 0 : index
    %c2 = arith.constant 2 : index
    %19 = memref.load %arg1[%c0_10, %c2] : memref<2x3xf32, #tpu.memory_space<smem>>
    %20 = vector.broadcast %19 : f32 to vector<2x1x128xf32>
    %21 = arith.mulf %20, %2 : vector<2x1x128xf32>
    %c1_11 = arith.constant 1 : index
    %c2_12 = arith.constant 2 : index
    %22 = memref.load %arg1[%c1_11, %c2_12] : memref<2x3xf32, #tpu.memory_space<smem>>
    %23 = vector.broadcast %22 : f32 to vector<2x1x128xf32>
    %24 = arith.mulf %23, %4 : vector<2x1x128xf32>
    %25 = arith.addf %21, %24 : vector<2x1x128xf32>
    %26 = tpu.iota {dimensions = array<i32: 2>} : vector<2x1x128xi32>
    %c1_i32 = arith.constant 1 : i32
    %27 = tpu.dynamic_rotate %11 by %c1_i32 dim 2 : vector<2x1x128xf32>, i32 -> vector<2x1x128xf32>
    %c127_i32 = arith.constant 127 : i32
    %28 = tpu.dynamic_rotate %25 by %c127_i32 dim 2 : vector<2x1x128xf32>, i32 -> vector<2x1x128xf32>
    %cst_13 = arith.constant 0.000000e+00 : f32
    %29 = vector.broadcast %cst_13 : f32 to vector<2x1x128xf32>
    %c1_i32_14 = arith.constant 1 : i32
    %30 = vector.broadcast %c1_i32_14 : i32 to vector<2x1x128xi32>
    %31 = arith.cmpi sge, %26, %30 : vector<2x1x128xi32>
    %32 = arith.select %31, %27, %29 : vector<2x1x128xi1>, vector<2x1x128xf32>
    %33 = arith.addf %18, %32 : vector<2x1x128xf32>
    %c127_i32_15 = arith.constant 127 : i32
    %34 = vector.broadcast %c127_i32_15 : i32 to vector<2x1x128xi32>
    %35 = arith.cmpi slt, %26, %34 : vector<2x1x128xi32>
    %36 = arith.select %35, %28, %29 : vector<2x1x128xi1>, vector<2x1x128xf32>
    %37 = arith.addf %33, %36 : vector<2x1x128xf32>
    %38 = arith.negf %37 : vector<2x1x128xf32>
    %39 = math.exp %38 : vector<2x1x128xf32>
    %cst_16 = arith.constant 1.000000e+00 : f32
    %40 = vector.broadcast %cst_16 : f32 to vector<2x1x128xf32>
    %41 = arith.addf %40, %39 : vector<2x1x128xf32>
    %42 = arith.divf %40, %41 : vector<2x1x128xf32>
    %43 = vector.broadcast %42 : vector<2x1x128xf32> to vector<2x4x128xf32>
    %44 = arith.mulf %43, %0 : vector<2x4x128xf32>
    %c0_17 = arith.constant 0 : index
    %c0_18 = arith.constant 0 : index
    %c0_19 = arith.constant 0 : index
    %45 = vector.load %arg3[%c0_17, %c0_18, %c0_19] : memref<2x4x128xf32, #tpu.memory_space<vmem>>, vector<2x4x128xf32>
    tpu.vector_store %arg3[%c0_17, %c0_18, %c0_19], %44 {strides = array<i32>} : memref<2x4x128xf32, #tpu.memory_space<vmem>>, vector<2x4x128xf32>,
    return
  }
  func.func @transform_0(%arg0: i32) -> (i32, i32) {
    %c0_i32 = arith.constant 0 : i32
    %c0_i32_0 = arith.constant 0 : i32
    %c0_i32_1 = arith.constant 0 : i32
    return %c0_i32, %c0_i32_0 : i32, i32
  }
  func.func @transform_1(%arg0: i32) -> (i32, i32, i32) {
    %c0_i32 = arith.constant 0 : i32
    %c0_i32_0 = arith.constant 0 : i32
    %c0_i32_1 = arith.constant 0 : i32
    return %arg0, %c0_i32, %c0_i32_0 : i32, i32, i32
  }
  func.func @transform_2(%arg0: i32) -> (i32, i32, i32) {
    %c0_i32 = arith.constant 0 : i32
    %c0_i32_0 = arith.constant 0 : i32
    %c0_i32_1 = arith.constant 0 : i32
    return %arg0, %c0_i32, %c0_i32_0 : i32, i32, i32
  }
}

</mosaic_0001>

<bundles_post_ra>
// kernel: tpu_custom_call.1
= control target key start
LH: loop header
LB: loop body
LE: loop exit
PB: predicated region body
PF: predicated region fallthrough
CT: control target
= control target key end

     0   :  { %7 = vsyncpa [#allocation5], 0  ;;  %s334_s0 = inlined_call_operand.hbm [shape: f32[2,3], index: 0, kind: input, shape index: {}]   ;;  %s335_s1 = inlined_call_operand.hbm [shape: f32[2,4,128], index: 1, kind: input, shape index: {}]   ;;  %s336_s2 = inlined_call_operand.hbm [shape: f32[2,4,128], index: 2, kind: output, shape index: {}]  }
   0x1   :  { %8 = vsyncpa [#allocation3], 0 }
   0x2   :  { %9 = vsyncpa [#allocation4], 0  ;;  %s182_s11 = scalar_lea.hbm %s334_s0, 32 }
   0x3   :  { %p183_p0 = scmp.ne.s32.totalorder %s334_s0, %s182_s11  ;;  %p186_p1 = scmp.lt.u32.totalorder %s182_s11, %s334_s0 }
   0x5   :  { %p188_p2 = pnand %p186_p1, %p183_p0 }
   0x7   :  { %191 = shalt.err (!%p188_p2)
}
   0x8   :  { %s242_s16 = smov [#allocation2]   ;;  %s243_s19 = smov [#allocation6]  }
   0x9   :  { %17 = dma.hbm_to_smem %s334_s0, 32, %s242_s16, [#allocation5]  }
   0xa   :  { %s23_s20 = sshll.u32 %s243_s19, 4  ;;  %s192_s23 = scalar_lea.hbm %s335_s1, 128  ;;  %s24_s20 = int_to_ptr.vmem [resolvable:$true] %s23_s20 }
   0xb   :  { %p193_p3 = scmp.ne.s32.totalorder %s335_s1, %s192_s23  ;;  %p196_p4 = scmp.lt.u32.totalorder %s192_s23, %s335_s1 }
   0xd   :  { %p198_p5 = pnand %p196_p4, %p193_p3 }
   0xf   :  { %201 = shalt.err (!%p198_p5)
}
  0x10   :  { %s202_s28 = scalar_lea.vmem %s24_s20, 128  ;;  %p207_p7 = scmp.lt.s32.totalorder %s24_s20, %s24_s20 }
  0x11   :  { %p203_p6 = scmp.ne.s32.totalorder %s24_s20, %s202_s28  ;;  %p208_p8 = scmp.lt.s32.totalorder %s202_s28, %s202_s28 }
  0x13   :  { %p209_p9 = por %p208_p8, %p207_p7 }
  0x15   :  { %p210_p10 = pnand %p209_p9, %p203_p6 }
  0x17   :  { %213 = shalt.err (!%p210_p10)
}
  0x18   :  { %s244_s0 = smov 64   ;;  %s245_s29 = smov 4  }
  0x19   :  { %29 = dma.hbm_to_vmem [thread:$0]  %s335_s1, 128, %s24_s20, [#allocation3], %s244_s0, %s244_s0, %s245_s29  }
  0x1a   :  { %236 = dma.done.wait [#allocation5], 32  }
  0x1b   :  { %237 = vsyncadd [#allocation5], 4294967264 }
  0x1c   :  { %238 = dma.done.wait [#allocation3], 128  }
  0x1d   :  { %239 = vsyncadd [#allocation3], 4294967168 }
  0x1e   :  { %36 = sfence }
  0x1f   :  { %v291_v0 = vld [vmem:[#allocation6] sm:$0xf]  ;;  %v293_v1 = vld [vmem:[#allocation6 + $0x4] sm:$0xf]  ;;  %vm39_vm0 = vcmask 1043456   ;;  %s299_s4 = sld [smem:[#allocation2]]  ;;  %v98_v54 = vlaneseq }
  0x20   :  { %v40_v2 = vsel %vm39_vm0, %v291_v0, 0.0  ;;  %v47_v3 = vsel %vm39_vm0, %v293_v1, 0.0  ;;  %v54_v4 = vsel %vm39_vm0, %v291_v0, -inf  ;;  %v61_v5 = vsel %vm39_vm0, %v293_v1, -inf  ;;  %s301_s1 = sld [smem:[#allocation2 + $0x80]]  ;;  %s303_s5 = sld [smem:[#allocation2 + $0x2]] }
  0x21   :  { %v41_v6 = vrot.slane %v40_v2, 4  ;;  %v48_v7 = vrot.slane %v47_v3, 4  ;;  %v55_v8 = vrot.slane %v54_v4, 4  ;;  %v62_v9 = vrot.slane %v61_v5, 4  ;;  %s305_s6 = sld [smem:[#allocation2 + $0x82]]  ;;  %s307_s7 = sld [smem:[#allocation2 + $0x1]] }
  0x22   :  { %s309_s8 = sld [smem:[#allocation2 + $0x81]]  ;;  %s246_s9 = smov 1   ;;  %v99_v55 = vand.u32 127, %v98_v54 }
  0x23   :  { %v42_v10 = vadd.f32 %v41_v6, %v40_v2  ;;  %v49_v11 = vadd.f32 %v48_v7, %v47_v3  ;;  %v56_v12 = vmax.f32 %v54_v4, %v55_v8  ;;  %v63_v13 = vmax.f32 %v61_v5, %v62_v9  ;;  %s247_s10 = smov 127   ;;  %s248_s11 = smov [#allocation7]  }
  0x24   :  { %vm108_vm1 = vcmp.ge.s32.totalorder %v99_v55, 1  ;;  %vm113_vm2 = vcmp.lt.s32.totalorder %v99_v55, 127  ;;  %s147_s12 = sshll.u32 %s248_s11, 4  ;;  %s148_s12 = int_to_ptr.vmem [resolvable:$true] %s147_s12 }
  0x25   :  { %v43_v14 = vrot.slane %v42_v10, 2  ;;  %v50_v15 = vrot.slane %v49_v11, 2  ;;  %v57_v16 = vrot.slane %v56_v12, 2  ;;  %v64_v17 = vrot.slane %v63_v13, 2  ;;  %s214_s13 = scalar_lea.vmem %s148_s12, 128  ;;  %p219_p12 = scmp.lt.s32.totalorder %s148_s12, %s148_s12 }
  0x26   :  { %v69_v26 = vstv %s299_s4  ;;  %v73_v27 = vstv %s301_s1  ;;  %v89_v28 = vstv %s303_s5  ;;  %p215_p11 = scmp.ne.s32.totalorder %s148_s12, %s214_s13  ;;  %p220_p13 = scmp.lt.s32.totalorder %s214_s13, %s214_s13 }
  0x27   :  { %v44_v18 = vadd.f32 %v43_v14, %v42_v10  ;;  %v51_v19 = vadd.f32 %v50_v15, %v49_v11  ;;  %v58_v20 = vmax.f32 %v56_v12, %v57_v16  ;;  %v65_v21 = vmax.f32 %v63_v13, %v64_v17 }
  0x28   :  { %v93_v29 = vstv %s305_s6  ;;  %v79_v34 = vstv %s307_s7  ;;  %v83_v35 = vstv %s309_s8  ;;  %v131_v12 = vshrl.u32 %v98_v54, 7  ;;  %p221_p0 = por %p220_p13, %p219_p12 }
  0x29   :  { %v45_v22 = vrot.slane %v44_v18, 1  ;;  %v52_v23 = vrot.slane %v51_v19, 1  ;;  %v59_v24 = vrot.slane %v58_v20, 1  ;;  %v66_v25 = vrot.slane %v65_v21, 1 }
  0x2a   :  { %v132_v13 = vsub.s32 0, %v131_v12  ;;  %p222_p1 = pnand %p221_p0, %p215_p11 }
  0x2b   :  { %v46_v30 = vadd.f32 %v45_v22, %v44_v18  ;;  %v53_v31 = vadd.f32 %v52_v23, %v51_v19  ;;  %v60_v32 = vmax.f32 %v58_v20, %v59_v24  ;;  %v67_v33 = vmax.f32 %v65_v21, %v66_v25 }
  0x2d   :  { %v70_v36 = vmul.f32 %v69_v26, %v46_v30  ;;  %v71_v37 = vmul.f32 %v69_v26, %v53_v31  ;;  %v74_v38 = vmul.f32 %v73_v27, %v60_v32  ;;  %v75_v39 = vmul.f32 %v73_v27, %v67_v33 }
  0x2e   :  { %v90_v40 = vmul.f32 %v89_v28, %v46_v30  ;;  %v91_v41 = vmul.f32 %v89_v28, %v53_v31  ;;  %v94_v42 = vmul.f32 %v93_v29, %v60_v32  ;;  %v95_v43 = vmul.f32 %v93_v29, %v67_v33 }
  0x2f   :  { %v76_v44 = vadd.f32 %v74_v38, %v70_v36  ;;  %v80_v45 = vmul.f32 %v79_v34, %v46_v30  ;;  %v84_v46 = vmul.f32 %v83_v35, %v60_v32  ;;  %v81_v48 = vmul.f32 %v79_v34, %v53_v31 }
  0x30   :  { %v96_v47 = vadd.f32 %v94_v42, %v90_v40  ;;  %v85_v49 = vmul.f32 %v83_v35, %v67_v33  ;;  %v77_v50 = vadd.f32 %v75_v39, %v71_v37  ;;  %v97_v52 = vadd.f32 %v95_v43, %v91_v41 }
  0x31   :  { %100 = vrot.lane.b32.xlu0 %v76_v44, %s246_s9  ;;  %v86_v51 = vadd.f32 %v84_v46, %v80_v45 }
  0x32   :  { %104 = vrot.lane.b32.xlu1 %v96_v47, %s247_s10  ;;  %v87_v53 = vadd.f32 %v85_v49, %v81_v48 }
  0x35   :  { %102 = vrot.lane.b32.xlu0 %v77_v50, %s246_s9 }
  0x36   :  { %106 = vrot.lane.b32.xlu1 %v97_v52, %s247_s10 }
  0xa3   :  { %v101_v56 = vpop.permute.xlu0 %100 }
  0xa4   :  { %v109_v57 = vsel %vm108_vm1, %v101_v56, 0.0  ;;  %v105_v58 = vpop.permute.xlu1 %104 }
  0xa5   :  { %v111_v59 = vadd.f32 %v109_v57, %v86_v51  ;;  %v114_v60 = vsel %vm113_vm2, %v105_v58, 0.0 }
  0xa7   :  { %v116_v61 = vadd.f32 %v114_v60, %v111_v59  ;;  %v103_v62 = vpop.permute.xlu0 %102 }
  0xa8   :  { %v110_v63 = vsel %vm108_vm1, %v103_v62, 0.0  ;;  %v107_v2 = vpop.permute.xlu1 %106 }
  0xa9   :  { %v165_v3 = vmul.f32 -1.442695, %v116_v61  ;;  %v112_v4 = vadd.f32 %v110_v63, %v87_v53  ;;  %v115_v5 = vsel %vm113_vm2, %v107_v2, 0.0 }
  0xab   :  { %174 = vpow2.f32 %v165_v3  ;;  %v117_v6 = vadd.f32 %v115_v5, %v112_v4 }
  0xad   :  { %v166_v7 = vmul.f32 -1.442695, %v117_v6 }
  0xaf   :  { %176 = vpow2.f32 %v166_v7 }
  0xb5   :  { %v175_v8 = vpop.eup %174 }
  0xb6   :  { %v124_v9 = vadd.f32 1.0, %v175_v8 }
  0xb8   :  { %178 = vrcp.f32 %v124_v9 }
  0xb9   :  { %v177_v10 = vpop.eup %176 }
  0xba   :  { %v125_v11 = vadd.f32 1.0, %v177_v10 }
  0xbc   :  { %180 = vrcp.f32 %v125_v11 }
  0xc2   :  { %v179_v14 = vpop.eup %178 }
  0xc3   :  { %v133_v15 = vrot.slane %v179_v14, %v132_v13 }
  0xc5   :  { %v138_v16 = vmul.f32 %v133_v15, %v291_v0 }
  0xc6   :  { %v181_v17 = vpop.eup %180 }
  0xc7   :  { %v137_v18 = vrot.slane %v181_v17, %v132_v13  ;;  %140 = vst [vmem:[#allocation7] sm:$0xf] %v138_v16 }
  0xc9   :  { %v139_v19 = vmul.f32 %v137_v18, %v293_v1 }
  0xcb   :  { %141 = vst [vmem:[#allocation7 + $0x4] sm:$0xf] %v139_v19 }
  0xcc   :  { %225 = shalt.err (!%p222_p1)
}
  0xcd   :  { %s226_s16 = scalar_lea.hbm %s336_s2, 128 }
  0xce   :  { %p227_p2 = scmp.ne.s32.totalorder %s336_s2, %s226_s16  ;;  %p230_p3 = scmp.lt.u32.totalorder %s226_s16, %s336_s2 }
  0xd0   :  { %p232_p4 = pnand %p230_p3, %p227_p2 }
  0xd2   :  { %235 = shalt.err (!%p232_p4)
}
  0xd3   :  { %153 = dma.vmem_to_hbm [thread:$0]  %s148_s12, 128, %s336_s2, [#allocation4], %s244_s0, %s244_s0, %s245_s29  }
  0xd4   :  { %240 = dma.done.wait [#allocation4], 128  }
  0xd5   :  { %241 = vsyncadd [#allocation4], 4294967168 }
  0xd6   :  { %157 = vsyncpa [#allocation3], 1 }
  0xd7   :  { %158 = vsyncpa [#allocation4], 1 }
  0xd8   :  { %159 = vsyncpa [#allocation5], 1 }

</bundles_post_ra>
